<compile_context>
chip_gen: v7x
topology: tpu7x:2x2x1
jax: 0.10.0
libtpu: 0.0.40
codegen_flags: <defaults>
</compile_context>

<pallas_src>
import functools
import math

import jax
import jax.numpy as jnp
from jax import lax
from jax.experimental import pallas as pl
from jax.experimental.pallas import tpu as pltpu


# --------------------------------------------------------------------------
# PE buffer construction (identical to the torch `pe` buffer).
# --------------------------------------------------------------------------
def make_pe_table(d_model: int, max_len: int = 5000) -> jnp.ndarray:
    """Sinusoidal table, shape (max_len, 1, d_model), float32."""
    position = jnp.arange(0, max_len, dtype=jnp.float32)[:, None]            # (L, 1)
    div_term = jnp.exp(
        jnp.arange(0, d_model, 2, dtype=jnp.float32) * (-math.log(10000.0) / d_model)
    )                                                                         # (D/2,)
    angles = position * div_term                                              # (L, D/2)
    pe = jnp.zeros((max_len, d_model), dtype=jnp.float32)
    pe = pe.at[:, 0::2].set(jnp.sin(angles))
    pe = pe.at[:, 1::2].set(jnp.cos(angles))
    return pe[:, None, :]                                                     # (L, 1, D)


# --------------------------------------------------------------------------
# Integer hash helpers (murmur3-style finalizer, int32 everywhere so it lowers
# on every TPU generation and in interpret mode).
# --------------------------------------------------------------------------
def _s32(x: int) -> int:
    """Python int -> signed 32-bit representative."""
    x &= 0xFFFFFFFF
    return x - (1 << 32) if x >= (1 << 31) else x


def _lsr32(x, k: int):
    """Logical shift right by k for int32 values."""
    return jnp.bitwise_and(x >> k, jnp.int32((1 << (32 - k)) - 1))


def _hash32(x, seed):
    """Counter-based hash: uniform int32 bits from (index, seed)."""
    x = x * jnp.int32(_s32(0x9E3779B1))
    x = x ^ seed
    x = x ^ _lsr32(x, 16)
    x = x * jnp.int32(_s32(0x85EBCA6B))
    x = x ^ _lsr32(x, 13)
    x = x * jnp.int32(_s32(0xC2B2AE35))
    x = x ^ _lsr32(x, 16)
    return x


# --------------------------------------------------------------------------
# Kernel: y = dropout(x + pe)  on one (TILE_S, B, D) block.
# --------------------------------------------------------------------------
def _pe_dropout_kernel(seed_ref, x_ref, pe_ref, o_ref, *,
                       p: float, training: bool,
                       tile_s: int, batch: int, d_model: int):
    # Broadcast add over the batch dim: (TILE_S, B, D) + (TILE_S, 1, D).
    y = x_ref[...] + pe_ref[...]

    if training and p >= 1.0:
        y = jnp.zeros_like(y)
    elif training and p > 0.0:
        shape = y.shape
        # Global element index -> tiling-invariant dropout mask.
        s0 = pl.program_id(0) * tile_s
        si = lax.broadcasted_iota(jnp.int32, shape, 0) + s0
        bi = lax.broadcasted_iota(jnp.int32, shape, 1)
        di = lax.broadcasted_iota(jnp.int32, shape, 2)
        idx = (si * batch + bi) * d_model + di

        bits = _hash32(idx, seed_ref[0])
        # Signed-int threshold chosen so P(bits < T) == p over uniform int32.
        threshold = jnp.int32(int(round(p * 4294967296.0)) - 2147483648)
        keep = bits >= threshold

        scale = jnp.asarray(1.0 / (1.0 - p), dtype=y.dtype)
        y = jnp.where(keep, y * scale, jnp.zeros_like(y))

    o_ref[...] = y.astype(o_ref.dtype)


# --------------------------------------------------------------------------
# Wrapper
# --------------------------------------------------------------------------
def positional_encoding_forward(
    x: jnp.ndarray,
    pe: jnp.ndarray,
    *,
    p: float = 0.1,
    training: bool = False,
    seed: int = 0,
) -> jnp.ndarray:
    """x: (seq_len, batch, d_model). Returns dropout(x + pe[:seq_len])."""
    S, B, D = x.shape
    pe_slice = pe[:S].astype(x.dtype)                 # (S, 1, D), matches x dtype
    seed_arr = jnp.array([seed], dtype=jnp.int32)

    # Tile the sequence axis so one x tile is ~2 MiB: with double-buffered
    # in/out streams that stays well under the default scoped VMEM on all
    # generations (16 MiB v5e, 32 MiB v6e/v7x).
    itemsize = jnp.dtype(x.dtype).itemsize
    bytes_per_s = max(1, B * D * itemsize)
    target_tile_bytes = 2 * 1024 * 1024
    tile_s = max(1, min(S, target_tile_bytes // bytes_per_s))
    grid = (pl.cdiv(S, tile_s),)

    kernel = functools.partial(
        _pe_dropout_kernel,
        p=float(p), training=bool(training),
        tile_s=tile_s, batch=B, d_model=D,
    )

    return pl.pallas_call(
        kernel,
        out_shape=jax.ShapeDtypeStruct((S, B, D), x.dtype),
        grid=grid,
        in_specs=[
            pl.BlockSpec(memory_space=pltpu.MemorySpace.SMEM),        # seed scalar
            pl.BlockSpec((tile_s, B, D), lambda i: (i, 0, 0)),        # x tile
            pl.BlockSpec((tile_s, 1, D), lambda i: (i, 0, 0)),        # pe tile
        ],
        out_specs=pl.BlockSpec((tile_s, B, D), lambda i: (i, 0, 0)),
        compiler_params=pltpu.CompilerParams(
            dimension_semantics=("parallel",),
        ),
    )(seed_arr, x, pe_slice)


# --------------------------------------------------------------------------
# Demo / correctness check
# --------------------------------------------------------------------------
if __name__ == "__main__":
    d_model = 128     # lane-dense (multiple of 128)
    seq_len = 16
    batch = 8         # fills the sublane plane (>= 8)
    max_len = 5000
    p_drop = 0.1

    key = jax.random.PRNGKey(0)
    x = jax.random.normal(key, (seq_len, batch, d_model), dtype=jnp.float32)

    pe = make_pe_table(d_model, max_len=max_len)
    base = x + pe[:seq_len].astype(x.dtype)           # reference (pre-dropout)

    # Eval mode: dropout is identity, must equal x + pe exactly.
    out = positional_encoding_forward(x, pe, p=p_drop, training=False)
    out = jax.block_until_ready(out)
    assert out.shape == x.shape
    assert jnp.allclose(out, base, atol=1e-6), "eval-mode mismatch vs reference"

    # Training mode: inverted dropout — kept values scaled by 1/(1-p), rest zero.
    out_train = positional_encoding_forward(x, pe, p=p_drop, training=True, seed=1234)
    out_train = jax.block_until_ready(out_train)
    assert out_train.shape == x.shape

    kept = out_train != 0
    frac_kept = float(jnp.mean(kept.astype(jnp.float32)))
    assert 0.75 < frac_kept < 0.99, f"unexpected keep fraction {frac_kept}"
    scale = 1.0 / (1.0 - p_drop)
    assert jnp.allclose(
        jnp.where(kept, out_train, 0.0),
        jnp.where(kept, base * scale, 0.0),
        atol=1e-5, rtol=1e-5,
    ), "training-mode kept values not scaled correctly"

    print("KERNEL_OK")
</pallas_src>

<mosaic_0001>
module attributes {stable_mosaic.version = 11 : i64} {
  func.func @_pe_dropout_kernel(%arg0: i32, %arg1: memref<1xi32, #tpu.memory_space<smem>>, %arg2: memref<16x8x128xf32, #tpu.memory_space<vmem>>, %arg3: memref<16x1x128xf32, #tpu.memory_space<vmem>>, %arg4: memref<16x8x128xf32, #tpu.memory_space<vmem>>) attributes {dimension_semantics = [#tpu.dimension_semantics<parallel>], iteration_bounds = array<i64: 1>, scalar_prefetch = 0 : i64, scratch_operands = 0 : i64, tpu.core_type = #tpu.core_type<tc>, window_params = [{transform_indices = @transform_0, window_bounds = array<i64: 1>}, {transform_indices = @transform_1, window_bounds = array<i64: 16, 8, 128>}, {transform_indices = @transform_2, window_bounds = array<i64: 16, 1, 128>}, {transform_indices = @transform_3, window_bounds = array<i64: 16, 8, 128>}]} {
    %c0 = arith.constant 0 : index
    %c0_0 = arith.constant 0 : index
    %c0_1 = arith.constant 0 : index
    %0 = vector.load %arg2[%c0, %c0_0, %c0_1] : memref<16x8x128xf32, #tpu.memory_space<vmem>>, vector<16x8x128xf32>
    %c0_2 = arith.constant 0 : index
    %c0_3 = arith.constant 0 : index
    %c0_4 = arith.constant 0 : index
    %1 = vector.load %arg3[%c0_2, %c0_3, %c0_4] : memref<16x1x128xf32, #tpu.memory_space<vmem>>, vector<16x1x128xf32>
    %2 = vector.broadcast %1 : vector<16x1x128xf32> to vector<16x8x128xf32>
    %3 = arith.addf %0, %2 : vector<16x8x128xf32>
    %c0_5 = arith.constant 0 : index
    %c0_6 = arith.constant 0 : index
    %c0_7 = arith.constant 0 : index
    %4 = vector.load %arg4[%c0_5, %c0_6, %c0_7] : memref<16x8x128xf32, #tpu.memory_space<vmem>>, vector<16x8x128xf32>
    tpu.vector_store %arg4[%c0_5, %c0_6, %c0_7], %3 {strides = array<i32>} : memref<16x8x128xf32, #tpu.memory_space<vmem>>, vector<16x8x128xf32>,
    return
  }
  func.func @transform_0(%arg0: i32) -> i32 {
    %c0_i32 = arith.constant 0 : i32
    %c0_i32_0 = arith.constant 0 : i32
    return %c0_i32 : i32
  }
  func.func @transform_1(%arg0: i32) -> (i32, i32, i32) {
    %c0_i32 = arith.constant 0 : i32
    %c0_i32_0 = arith.constant 0 : i32
    %c0_i32_1 = arith.constant 0 : i32
    return %arg0, %c0_i32, %c0_i32_0 : i32, i32, i32
  }
  func.func @transform_2(%arg0: i32) -> (i32, i32, i32) {
    %c0_i32 = arith.constant 0 : i32
    %c0_i32_0 = arith.constant 0 : i32
    %c0_i32_1 = arith.constant 0 : i32
    return %arg0, %c0_i32, %c0_i32_0 : i32, i32, i32
  }
  func.func @transform_3(%arg0: i32) -> (i32, i32, i32) {
    %c0_i32 = arith.constant 0 : i32
    %c0_i32_0 = arith.constant 0 : i32
    %c0_i32_1 = arith.constant 0 : i32
    return %arg0, %c0_i32, %c0_i32_0 : i32, i32, i32
  }
}

</mosaic_0001>

<bundles_post_ra>
// kernel: tpu_custom_call.1
= control target key start
LH: loop header
LB: loop body
LE: loop exit
PB: predicated region body
PF: predicated region fallthrough
CT: control target
= control target key end

     0   :  { %9 = vsyncpa [#allocation4], 0  ;;  %s386_s0 = inlined_call_operand.<no memory space> [shape: s32[1], index: 0, kind: input, shape index: {}]   ;;  %s387_s1 = inlined_call_operand.hbm [shape: f32[16,8,128], index: 1, kind: input, shape index: {}]   ;;  %s388_s2 = inlined_call_operand.hbm [shape: f32[16,1,128], index: 2, kind: input, shape index: {}]   ;;  %s389_s3 = inlined_call_operand.hbm [shape: f32[16,8,128], index: 3, kind: output, shape index: {}]  }
   0x1   :  { %10 = vsyncpa [#allocation7], 0 }
   0x2   :  { %11 = vsyncpa [#allocation5], 0  ;;  %s317_s12 = smov [#allocation3]   ;;  %s245_s16 = scalar_lea.hbm %s387_s1, 2048 }
   0x3   :  { %s19_s13 = sshll.u32 %s317_s12, 4  ;;  %p246_p0 = scmp.ne.s32.totalorder %s387_s1, %s245_s16  ;;  %s20_s13 = int_to_ptr.vmem [resolvable:$true] %s19_s13 }
   0x4   :  { %p249_p1 = scmp.lt.u32.totalorder %s245_s16, %s387_s1 }
   0x6   :  { %p251_p2 = pnand %p249_p1, %p246_p0 }
   0x8   :  { %254 = shalt.err (!%p251_p2)
}
   0x9   :  { %s255_s20 = scalar_lea.vmem %s20_s13, 2048  ;;  %p260_p4 = scmp.lt.s32.totalorder %s20_s13, %s20_s13 }
   0xa   :  { %p256_p3 = scmp.ne.s32.totalorder %s20_s13, %s255_s20  ;;  %p261_p5 = scmp.lt.s32.totalorder %s255_s20, %s255_s20 }
   0xc   :  { %p262_p6 = por %p261_p5, %p260_p4 }
   0xe   :  { %p263_p7 = pnand %p262_p6, %p256_p3 }
  0x10   :  { %266 = shalt.err (!%p263_p7)
}
  0x11   :  { %s318_s21 = smov 128   ;;  %s319_s22 = smov 8  }
  0x12   :  { %25 = dma.hbm_to_vmem [thread:$0]  %s387_s1, 2048, %s20_s13, [#allocation4], %s318_s21, %s318_s21, %s319_s22  }
  0x13   :  { %s320_s25 = smov [#allocation6]   ;;  %s267_s29 = scalar_lea.hbm %s388_s2, 256 }
  0x14   :  { %s31_s26 = sshll.u32 %s320_s25, 4  ;;  %p268_p8 = scmp.ne.s32.totalorder %s388_s2, %s267_s29  ;;  %s32_s26 = int_to_ptr.vmem [resolvable:$true] %s31_s26 }
  0x15   :  { %p271_p9 = scmp.lt.u32.totalorder %s267_s29, %s388_s2 }
  0x17   :  { %p273_p10 = pnand %p271_p9, %p268_p8 }
  0x19   :  { %276 = shalt.err (!%p273_p10)
}
  0x1a   :  { %s277_s7 = scalar_lea.vmem %s32_s26, 256  ;;  %p282_p12 = scmp.lt.s32.totalorder %s32_s26, %s32_s26 }
  0x1b   :  { %p278_p11 = scmp.ne.s32.totalorder %s32_s26, %s277_s7  ;;  %p283_p13 = scmp.lt.s32.totalorder %s277_s7, %s277_s7 }
  0x1d   :  { %p284_p0 = por %p283_p13, %p282_p12 }
  0x1f   :  { %p285_p1 = pnand %p284_p0, %p278_p11 }
  0x21   :  { %288 = shalt.err (!%p285_p1)
}
  0x22   :  { %s321_s1 = smov 16   ;;  %s322_s8 = smov 1  }
  0x23   :  { %37 = dma.hbm_to_vmem [thread:$0]  %s388_s2, 256, %s32_s26, [#allocation7], %s321_s1, %s321_s1, %s322_s8  }
  0x24   :  { %311 = dma.done.wait [#allocation4], 2048  }
  0x25   :  { %312 = vsyncadd [#allocation4], 4294965248 }
  0x26   :  { %313 = dma.done.wait [#allocation7], 256  }
  0x27   :  { %314 = vsyncadd [#allocation7], 4294967040  ;;  %v44_v0 = vld [vmem:[#allocation3] sm:$0xff]  ;;  %v45_v2 = vld [vmem:[#allocation3 + $0x8] sm:$0xff]  ;;  %s323_s2 = smov [#allocation8]  }
  0x28   :  { %v222_v1 = vld [vmem:[#allocation6] ss:$0 sm:$0xff]  ;;  %v223_v4 = vld [vmem:[#allocation6 + $0x1] ss:$0 sm:$0xff]  ;;  %v46_v5 = vld [vmem:[#allocation3 + $0x10] sm:$0xff]  ;;  %s209_s11 = sshll.u32 %s323_s2, 4  ;;  %s210_s11 = int_to_ptr.vmem [resolvable:$true] %s209_s11 }
  0x29   :  { %v172_v3 = vadd.f32 %v222_v1, %v44_v0  ;;  %v224_v6 = vld [vmem:[#allocation6 + $0x2] ss:$0 sm:$0xff]  ;;  %v173_v7 = vadd.f32 %v223_v4, %v45_v2  ;;  %v47_v9 = vld [vmem:[#allocation3 + $0x18] sm:$0xff]  ;;  %v225_v10 = vld [vmem:[#allocation6 + $0x3] ss:$0 sm:$0xff]  ;;  %s289_s12 = scalar_lea.vmem %s210_s11, 2048  ;;  %p294_p3 = scmp.lt.s32.totalorder %s210_s11, %s210_s11 }
  0x2a   :  { %v174_v8 = vadd.f32 %v224_v6, %v46_v5  ;;  %v48_v11 = vld [vmem:[#allocation3 + $0x20] sm:$0xff]  ;;  %v175_v12 = vadd.f32 %v225_v10, %v47_v9  ;;  %v49_v14 = vld [vmem:[#allocation3 + $0x28] sm:$0xff]  ;;  %v50_v18 = vld [vmem:[#allocation3 + $0x30] sm:$0xff]  ;;  %p290_p2 = scmp.ne.s32.totalorder %s210_s11, %s289_s12  ;;  %p295_p4 = scmp.lt.s32.totalorder %s289_s12, %s289_s12 }
  0x2b   :  { %188 = vst [vmem:[#allocation8] sm:$0xff] %v172_v3  ;;  %v226_v13 = vld [vmem:[#allocation6 + $0x4] ss:$0 sm:$0xff]  ;;  %v227_v15 = vld [vmem:[#allocation6 + $0x5] ss:$0 sm:$0xff]  ;;  %189 = vst [vmem:[#allocation8 + $0x8] sm:$0xff] %v173_v7 }
  0x2c   :  { %190 = vst [vmem:[#allocation8 + $0x10] sm:$0xff] %v174_v8  ;;  %v176_v16 = vadd.f32 %v226_v13, %v48_v11  ;;  %v177_v17 = vadd.f32 %v227_v15, %v49_v14  ;;  %v228_v19 = vld [vmem:[#allocation6 + $0x6] ss:$0 sm:$0xff]  ;;  %v51_v20 = vld [vmem:[#allocation3 + $0x38] sm:$0xff]  ;;  %191 = vst [vmem:[#allocation8 + $0x18] sm:$0xff] %v175_v12  ;;  %p296_p5 = por %p295_p4, %p294_p3 }
  0x2d   :  { %v178_v21 = vadd.f32 %v228_v19, %v50_v18  ;;  %v229_v22 = vld [vmem:[#allocation6 + $0x7] ss:$0 sm:$0xff]  ;;  %v230_v24 = vld [vmem:[#allocation6 + $0x8] ss:$0 sm:$0xff]  ;;  %v231_v28 = vld [vmem:[#allocation6 + $0x9] ss:$0 sm:$0xff] }
  0x2e   :  { %v52_v23 = vld [vmem:[#allocation3 + $0x40] sm:$0xff]  ;;  %192 = vst [vmem:[#allocation8 + $0x20] sm:$0xff] %v176_v16  ;;  %193 = vst [vmem:[#allocation8 + $0x28] sm:$0xff] %v177_v17  ;;  %v179_v25 = vadd.f32 %v229_v22, %v51_v20  ;;  %v53_v27 = vld [vmem:[#allocation3 + $0x48] sm:$0xff]  ;;  %p297_p6 = pnand %p296_p5, %p290_p2 }
  0x2f   :  { %v180_v26 = vadd.f32 %v230_v24, %v52_v23  ;;  %v54_v29 = vld [vmem:[#allocation3 + $0x50] sm:$0xff]  ;;  %194 = vst [vmem:[#allocation8 + $0x30] sm:$0xff] %v178_v21  ;;  %v181_v30 = vadd.f32 %v231_v28, %v53_v27  ;;  %v232_v31 = vld [vmem:[#allocation6 + $0xa] ss:$0 sm:$0xff]  ;;  %v55_v32 = vld [vmem:[#allocation3 + $0x58] sm:$0xff] }
  0x30   :  { %v233_v33 = vld [vmem:[#allocation6 + $0xb] ss:$0 sm:$0xff]  ;;  %195 = vst [vmem:[#allocation8 + $0x38] sm:$0xff] %v179_v25  ;;  %v182_v34 = vadd.f32 %v232_v31, %v54_v29  ;;  %v56_v36 = vld [vmem:[#allocation3 + $0x60] sm:$0xff]  ;;  %v234_v37 = vld [vmem:[#allocation6 + $0xc] ss:$0 sm:$0xff] }
  0x31   :  { %196 = vst [vmem:[#allocation8 + $0x40] sm:$0xff] %v180_v26  ;;  %v183_v35 = vadd.f32 %v233_v33, %v55_v32  ;;  %v57_v38 = vld [vmem:[#allocation3 + $0x68] sm:$0xff]  ;;  %197 = vst [vmem:[#allocation8 + $0x48] sm:$0xff] %v181_v30  ;;  %v184_v39 = vadd.f32 %v234_v37, %v56_v36  ;;  %v58_v41 = vld [vmem:[#allocation3 + $0x70] sm:$0xff] }
  0x32   :  { %v235_v40 = vld [vmem:[#allocation6 + $0xd] ss:$0 sm:$0xff]  ;;  %v236_v42 = vld [vmem:[#allocation6 + $0xe] ss:$0 sm:$0xff]  ;;  %198 = vst [vmem:[#allocation8 + $0x50] sm:$0xff] %v182_v34  ;;  %v59_v45 = vld [vmem:[#allocation3 + $0x78] sm:$0xff] }
  0x33   :  { %199 = vst [vmem:[#allocation8 + $0x58] sm:$0xff] %v183_v35  ;;  %v185_v43 = vadd.f32 %v235_v40, %v57_v38  ;;  %v186_v44 = vadd.f32 %v236_v42, %v58_v41  ;;  %v237_v46 = vld [vmem:[#allocation6 + $0xf] ss:$0 sm:$0xff]  ;;  %200 = vst [vmem:[#allocation8 + $0x60] sm:$0xff] %v184_v39 }
  0x34   :  { %v187_v47 = vadd.f32 %v237_v46, %v59_v45 }
  0x35   :  { %201 = vst [vmem:[#allocation8 + $0x68] sm:$0xff] %v185_v43  ;;  %202 = vst [vmem:[#allocation8 + $0x70] sm:$0xff] %v186_v44 }
  0x36   :  { %203 = vst [vmem:[#allocation8 + $0x78] sm:$0xff] %v187_v47 }
  0x37   :  { %300 = shalt.err (!%p297_p6)
}
  0x38   :  { %s301_s15 = scalar_lea.hbm %s389_s3, 2048 }
  0x39   :  { %p302_p7 = scmp.ne.s32.totalorder %s389_s3, %s301_s15  ;;  %p305_p8 = scmp.lt.u32.totalorder %s301_s15, %s389_s3 }
  0x3b   :  { %p307_p9 = pnand %p305_p8, %p302_p7 }
  0x3d   :  { %310 = shalt.err (!%p307_p9)
}
  0x3e   :  { %215 = dma.vmem_to_hbm [thread:$0]  %s210_s11, 2048, %s389_s3, [#allocation5], %s318_s21, %s318_s21, %s319_s22  }
  0x3f   :  { %315 = dma.done.wait [#allocation5], 2048  }
  0x40   :  { %316 = vsyncadd [#allocation5], 4294965248 }
  0x41   :  { %219 = vsyncpa [#allocation4], 1 }
  0x42   :  { %220 = vsyncpa [#allocation7], 1 }
  0x43   :  { %221 = vsyncpa [#allocation5], 1 }

</bundles_post_ra>
